<compile_context>
chip_gen: v7x
topology: tpu7x:2x2x1
jax: 0.10.0
libtpu: 0.0.40
codegen_flags: <defaults>
</compile_context>

<pallas_src>
import functools

import jax
import jax.numpy as jnp
from jax.experimental import pallas as pl
from jax.experimental.pallas import tpu as pltpu


def _cdiv(a, b):
    return -(-a // b)


# --------------------------------------------------------------------------
# 4-D (NCHW -> N, C, HW) kernel: grid = (channel slab s, pass p, n block, hw tile)
# --------------------------------------------------------------------------
def _bn_nchw_kernel(x_ref, g_ref, b_ref, o_ref,
                    sum_ref, sq_ref, scale_ref, shift_ref,
                    *, eps, inv_m, n_total, hw_total, mask_n, mask_hw):
    p = pl.program_id(1)
    n = pl.program_id(2)
    t = pl.program_id(3)
    last_n = pl.num_programs(2) - 1
    last_t = pl.num_programs(3) - 1
    n_blk, c_slab, hw_tile = x_ref.shape

    @pl.when(p == 0)
    def _stats_pass():
        # zero this slab's accumulators on its first pass-0 tile
        @pl.when(jnp.logical_and(n == 0, t == 0))
        def _init():
            sum_ref[...] = jnp.zeros_like(sum_ref)
            sq_ref[...] = jnp.zeros_like(sq_ref)

        x = x_ref[...].astype(jnp.float32)           # (n_blk, c_slab, hw_tile)
        if mask_n:                                    # partial last N block
            rows = jax.lax.broadcasted_iota(jnp.int32, (n_blk, 1, 1), 0)
            x = jnp.where(rows + n * n_blk < n_total, x, 0.0)
        if mask_hw:                                   # partial last HW tile
            lanes = jax.lax.broadcasted_iota(jnp.int32, (1, 1, hw_tile), 2)
            x = jnp.where(lanes + t * hw_tile < hw_total, x, 0.0)

        # full-tile-wide f32 partial sums: pure VPU adds in the hot loop,
        # no cross-lane reduce per tile, much better accumulation accuracy.
        sum_ref[...] += jnp.sum(x, axis=0)            # (c_slab, hw_tile)
        sq_ref[...] += jnp.sum(x * x, axis=0)

        # single cross-lane reduce per slab, then fold into fused scale/shift
        @pl.when(jnp.logical_and(n == last_n, t == last_t))
        def _finalize():
            tot = jnp.sum(sum_ref[...], axis=1, keepdims=True)   # (c_slab, 1)
            tot2 = jnp.sum(sq_ref[...], axis=1, keepdims=True)
            mean = tot * inv_m
            var = jnp.maximum(tot2 * inv_m - mean * mean, 0.0)   # clamp >= 0
            scale = g_ref[...] * jax.lax.rsqrt(var + eps)
            scale_ref[...] = scale
            shift_ref[...] = b_ref[...] - mean * scale

    @pl.when(p == 1)
    def _normalize_pass():
        x = x_ref[...].astype(jnp.float32)
        y = x * scale_ref[...][None] + shift_ref[...][None]      # lane broadcast
        o_ref[...] = y.astype(o_ref.dtype)


def _nchw_plan(N, C, HW, itemsize):
    """Pick (c_slab, num_slabs, n_blk, hw_tile)."""
    sub = {1: 32, 2: 16}.get(itemsize, 8)   # sublane packing granularity
    TILE = 3 << 19                          # ~1.5 MiB streaming block target
    RESIDENT = 6 << 20                      # per-slab VMEM-resident cap

    # channel slabs: independent channel ranges for the 2 v7x TensorCores
    # (only requires c_slab to be a multiple of `sub`; last slab may be padded)
    if C >= 2 * sub:
        c_slab = _cdiv(_cdiv(C, 2), sub) * sub
    else:
        c_slab = C
    # very large C: shrink slabs further so one lane-row stays within budget
    while c_slab > sub and c_slab * min(HW, 128) * itemsize > TILE:
        c_slab = _cdiv(_cdiv(c_slab, 2), sub) * sub
    num_slabs = _cdiv(C, c_slab)

    if N * c_slab * HW * itemsize <= RESIDENT:
        # whole slab fits in one block: input block index is identical in both
        # passes -> Pallas skips the re-fetch -> 1 read + 1 write of x.
        n_blk, hw_tile = N, HW
    elif c_slab * HW * itemsize <= TILE:
        hw_tile = HW                                     # full rows, block over N
        n_blk = max(1, min(N, TILE // (c_slab * HW * itemsize)))
    else:
        # HW >= 128 guaranteed here; lane-aligned multiple-of-128 tile
        hw_tile = max(128, min(HW // 128, TILE // (c_slab * itemsize * 128)) * 128)
        n_blk = 1
    return c_slab, num_slabs, n_blk, hw_tile


def _bn_nchw(x3, g, b, eps):
    N, C, HW = x3.shape
    itemsize = x3.dtype.itemsize
    c_slab, num_slabs, n_blk, hw_tile = _nchw_plan(N, C, HW, itemsize)
    n_tiles = _cdiv(N, n_blk)
    hw_tiles = _cdiv(HW, hw_tile)
    grid = (num_slabs, 2, n_tiles, hw_tiles)

    kernel = functools.partial(
        _bn_nchw_kernel, eps=float(eps), inv_m=1.0 / float(N * HW),
        n_total=N, hw_total=HW,
        mask_n=(N % n_blk != 0), mask_hw=(HW % hw_tile != 0))

    # VMEM budget from actual block sizes (2x double-buffered in + out + scratch)
    blk_bytes = n_blk * c_slab * hw_tile * itemsize
    acc_bytes = 2 * c_slab * hw_tile * 4 + 4 * c_slab * 4
    need = 4 * blk_bytes + acc_bytes + (1 << 20)
    vmem_limit = int(min(100 << 20, max(16 << 20, need + (need >> 2))))

    cost = pl.CostEstimate(
        flops=int(6 * N * C * HW + 8 * C),
        transcendentals=int(C),
        bytes_accessed=int(3 * x3.size * itemsize))

    out3 = pl.pallas_call(
        kernel,
        out_shape=jax.ShapeDtypeStruct((N, C, HW), x3.dtype),
        grid=grid,
        in_specs=[
            pl.BlockSpec((n_blk, c_slab, hw_tile), lambda s, p, n, t: (n, s, t)),
            pl.BlockSpec((c_slab, 1), lambda s, p, n, t: (s, 0)),
            pl.BlockSpec((c_slab, 1), lambda s, p, n, t: (s, 0)),
        ],
        # pass 0 pins the (unwritten) output window to pass 1's first block, so
        # no extra writeback traffic is generated during the stats pass.
        out_specs=pl.BlockSpec((n_blk, c_slab, hw_tile),
                               lambda s, p, n, t: (n * p, s, t * p)),
        scratch_shapes=[
            pltpu.VMEM((c_slab, hw_tile), jnp.float32),   # wide partial sums
            pltpu.VMEM((c_slab, hw_tile), jnp.float32),   # wide partial sum-of-squares
            pltpu.VMEM((c_slab, 1), jnp.float32),         # fused scale
            pltpu.VMEM((c_slab, 1), jnp.float32),         # fused shift
        ],
        compiler_params=pltpu.CompilerParams(
            dimension_semantics=("parallel", "arbitrary", "arbitrary", "arbitrary"),
            vmem_limit_bytes=vmem_limit),
        cost_estimate=cost,
    )(x3, g, b)
    return out3


# --------------------------------------------------------------------------
# 2-D (N, C) kernel: C on lanes, N blocked on sublanes. grid = (pass p, n block)
# --------------------------------------------------------------------------
def _bn_nc_kernel(x_ref, g_ref, b_ref, o_ref,
                  sum_ref, sq_ref, scale_ref, shift_ref,
                  *, eps, inv_m, n_total, mask_n):
    p = pl.program_id(0)
    n = pl.program_id(1)
    last_n = pl.num_programs(1) - 1
    n_blk, _ = x_ref.shape

    @pl.when(p == 0)
    def _stats_pass():
        @pl.when(n == 0)
        def _init():
            sum_ref[...] = jnp.zeros_like(sum_ref)
            sq_ref[...] = jnp.zeros_like(sq_ref)

        x = x_ref[...].astype(jnp.float32)            # (n_blk, C)
        if mask_n:
            rows = jax.lax.broadcasted_iota(jnp.int32, (n_blk, 1), 0)
            x = jnp.where(rows + n * n_blk < n_total, x, 0.0)
        sum_ref[...] += jnp.sum(x, axis=0, keepdims=True)
        sq_ref[...] += jnp.sum(x * x, axis=0, keepdims=True)

        @pl.when(n == last_n)
        def _finalize():
            mean = sum_ref[...] * inv_m
            var = jnp.maximum(sq_ref[...] * inv_m - mean * mean, 0.0)
            scale = g_ref[...] * jax.lax.rsqrt(var + eps)
            scale_ref[...] = scale
            shift_ref[...] = b_ref[...] - mean * scale

    @pl.when(p == 1)
    def _normalize_pass():
        x = x_ref[...].astype(jnp.float32)
        o_ref[...] = (x * scale_ref[...] + shift_ref[...]).astype(o_ref.dtype)


def _bn_nc(x, g, b, eps):
    N, C = x.shape
    itemsize = x.dtype.itemsize
    TILE = 3 << 19
    RESIDENT = 6 << 20
    if N * C * itemsize <= RESIDENT:
        n_blk = N            # resident: same input block both passes -> 1R + 1W
    else:
        n_blk = min(N, max(8, (TILE // (C * itemsize)) // 8 * 8))
        # TODO(synk): for extremely large feature counts a lane (C) split would
        # keep the block near the budget; not needed for typical C.
    n_tiles = _cdiv(N, n_blk)
    grid = (2, n_tiles)

    kernel = functools.partial(
        _bn_nc_kernel, eps=float(eps), inv_m=1.0 / float(N),
        n_total=N, mask_n=(N % n_blk != 0))

    blk_bytes = n_blk * C * itemsize
    need = 4 * blk_bytes + 4 * C * 4 + (1 << 20)
    vmem_limit = int(min(100 << 20, max(16 << 20, need + (need >> 2))))

    cost = pl.CostEstimate(
        flops=int(6 * N * C + 8 * C),
        transcendentals=int(C),
        bytes_accessed=int(3 * N * C * itemsize))

    return pl.pallas_call(
        kernel,
        out_shape=jax.ShapeDtypeStruct((N, C), x.dtype),
        grid=grid,
        in_specs=[
            pl.BlockSpec((n_blk, C), lambda p, n: (n, 0)),
            pl.BlockSpec((1, C), lambda p, n: (0, 0)),
            pl.BlockSpec((1, C), lambda p, n: (0, 0)),
        ],
        out_specs=pl.BlockSpec((n_blk, C), lambda p, n: (n * p, 0)),
        scratch_shapes=[
            pltpu.VMEM((1, C), jnp.float32),
            pltpu.VMEM((1, C), jnp.float32),
            pltpu.VMEM((1, C), jnp.float32),
            pltpu.VMEM((1, C), jnp.float32),
        ],
        compiler_params=pltpu.CompilerParams(
            dimension_semantics=("arbitrary", "arbitrary"),
            vmem_limit_bytes=vmem_limit),
        cost_estimate=cost,
    )(x, g.reshape(1, C), b.reshape(1, C))


# --------------------------------------------------------------------------
# Public forward + module wrapper
# --------------------------------------------------------------------------
def bn_forward(x, gamma, beta, eps=1e-5):
    """BatchNorm forward (training mode, batch statistics)."""
    gamma = gamma.astype(jnp.float32)
    beta = beta.astype(jnp.float32)
    if x.ndim == 2:
        # dedicated lane-dense path (C on lanes) instead of unsqueezing to HW=1
        return _bn_nc(x, gamma, beta, eps)
    if x.ndim != 4:
        raise ValueError(f"expected 2D or 4D input, got shape {x.shape}")
    N, C, H, W = x.shape
    x3 = x.reshape(N, C, H * W)          # contiguous merge, no HBM relayout
    out3 = _bn_nchw(x3, gamma.reshape(C, 1), beta.reshape(C, 1), eps)
    return out3.reshape(N, C, H, W)


class BN:
    """JAX/Pallas counterpart of the PyTorch BN module (forward only)."""

    def __init__(self, num_features, eps=1e-5, momentum=0.1,
                 affine=True, track_running_stats=True):
        self.num_features = num_features
        self.eps = float(eps)
        self.momentum = float(momentum)
        self.affine = affine
        self.track_running_stats = track_running_stats
        # reset_parameters(): gamma=1, beta=0, running_mean=0, running_var=1
        self.gamma = jnp.ones((num_features,), jnp.float32)
        self.beta = jnp.zeros((num_features,), jnp.float32)
        self.running_mean = jnp.zeros((num_features,), jnp.float32)
        self.running_var = jnp.ones((num_features,), jnp.float32)
        # TODO(synk): running_mean/running_var momentum update and the eval-mode
        # (running-stats) normalization path are training-time side effects of
        # the CUDA op and are not materialized here (forward uses batch stats).

    def __call__(self, x):
        return bn_forward(x, self.gamma, self.beta, self.eps)


# --------------------------------------------------------------------------
# Self-test
# --------------------------------------------------------------------------
def _bn_ref(x, gamma, beta, eps):
    xf = x.astype(jnp.float32)
    if x.ndim == 2:
        axes, shape = (0,), (1, -1)
    else:
        axes, shape = (0, 2, 3), (1, -1, 1, 1)
    mean = jnp.mean(xf, axis=axes, keepdims=True)
    var = jnp.mean((xf - mean) ** 2, axis=axes, keepdims=True)
    y = (xf - mean) / jnp.sqrt(var + eps)
    return y * gamma.reshape(shape) + beta.reshape(shape)


if __name__ == "__main__":
    key = jax.random.PRNGKey(0)
    ok = True

    # 4-D cases: (small resident), (odd N/HW + padded channel slab), (streaming)
    for (N, C, H, W) in [(2, 4, 16, 16), (3, 24, 7, 7), (40, 32, 56, 56)]:
        key, kx, kg, kb = jax.random.split(key, 4)
        x = jax.random.normal(kx, (N, C, H, W), jnp.float32) * 3.0 + 1.5
        bn = BN(C)
        bn.gamma = 0.5 + jax.random.uniform(kg, (C,), jnp.float32)
        bn.beta = jax.random.normal(kb, (C,), jnp.float32) * 0.3
        out = jax.block_until_ready(bn(x))
        ref = _bn_ref(x, bn.gamma, bn.beta, bn.eps)
        err = float(jnp.max(jnp.abs(out - ref)))
        ok = ok and (out.shape == x.shape) and (err < 2e-3)

    # 2-D (N, C) cases: resident and streaming (partial last N block)
    for (N, C) in [(32, 64), (4100, 768)]:
        key, kx, kg, kb = jax.random.split(key, 4)
        x = jax.random.normal(kx, (N, C), jnp.float32) * 2.0 - 0.5
        bn = BN(C)
        bn.gamma = 0.5 + jax.random.uniform(kg, (C,), jnp.float32)
        bn.beta = jax.random.normal(kb, (C,), jnp.float32) * 0.3
        out = jax.block_until_ready(bn(x))
        ref = _bn_ref(x, bn.gamma, bn.beta, bn.eps)
        err = float(jnp.max(jnp.abs(out - ref)))
        ok = ok and (out.shape == x.shape) and (err < 2e-3)

    if not ok:
        raise SystemExit("mismatch vs reference")
    print("KERNEL_OK")
</pallas_src>

<mosaic_0001>
module attributes {stable_mosaic.version = 11 : i64} {
  func.func @_bn_nchw_kernel(%arg0: i32, %arg1: i32, %arg2: i32, %arg3: i32, %arg4: memref<2x4x256xf32, #tpu.memory_space<vmem>>, %arg5: memref<4x1xf32, #tpu.memory_space<vmem>>, %arg6: memref<4x1xf32, #tpu.memory_space<vmem>>, %arg7: memref<2x4x256xf32, #tpu.memory_space<vmem>>, %arg8: memref<4x256xf32, #tpu.memory_space<vmem>>, %arg9: memref<4x256xf32, #tpu.memory_space<vmem>>, %arg10: memref<4x1xf32, #tpu.memory_space<vmem>>, %arg11: memref<4x1xf32, #tpu.memory_space<vmem>>) attributes {dimension_semantics = [#tpu.dimension_semantics<parallel>, #tpu.dimension_semantics<arbitrary>, #tpu.dimension_semantics<arbitrary>, #tpu.dimension_semantics<arbitrary>], iteration_bounds = array<i64: 1, 2, 1, 1>, scalar_prefetch = 0 : i64, scratch_operands = 4 : i64, tpu.core_type = #tpu.core_type<tc>, window_params = [{transform_indices = @transform_0, window_bounds = array<i64: 2, 4, 256>}, {transform_indices = @transform_1, window_bounds = array<i64: 4, 1>}, {transform_indices = @transform_2, window_bounds = array<i64: 4, 1>}, {transform_indices = @transform_3, window_bounds = array<i64: 2, 4, 256>}]} {
    %c0_i32 = arith.constant 0 : i32
    %0 = arith.cmpi eq, %arg1, %c0_i32 : i32
    %1 = arith.extui %0 : i1 to i32
    %c0_i32_0 = arith.constant 0 : i32
    %2 = arith.cmpi ne, %1, %c0_i32_0 : i32
    scf.if %2 {
      %c0_i32_2 = arith.constant 0 : i32
      %6 = arith.cmpi eq, %arg2, %c0_i32_2 : i32
      %c0_i32_3 = arith.constant 0 : i32
      %7 = arith.cmpi eq, %arg3, %c0_i32_3 : i32
      %8 = arith.andi %6, %7 : i1
      %9 = arith.extui %8 : i1 to i32
      %c0_i32_4 = arith.constant 0 : i32
      %10 = arith.cmpi ne, %9, %c0_i32_4 : i32
      scf.if %10 {
        %cst_19 = arith.constant 0.000000e+00 : f32
        %26 = vector.broadcast %cst_19 : f32 to vector<4x256xf32>
        %c0_20 = arith.constant 0 : index
        %c0_21 = arith.constant 0 : index
        %27 = vector.load %arg8[%c0_20, %c0_21] : memref<4x256xf32, #tpu.memory_space<vmem>>, vector<4x256xf32>
        tpu.vector_store %arg8[%c0_20, %c0_21], %26 {strides = array<i32>} : memref<4x256xf32, #tpu.memory_space<vmem>>, vector<4x256xf32>,
        %cst_22 = arith.constant 0.000000e+00 : f32
        %28 = vector.broadcast %cst_22 : f32 to vector<4x256xf32>
        %c0_23 = arith.constant 0 : index
        %c0_24 = arith.constant 0 : index
        %29 = vector.load %arg9[%c0_23, %c0_24] : memref<4x256xf32, #tpu.memory_space<vmem>>, vector<4x256xf32>
        tpu.vector_store %arg9[%c0_23, %c0_24], %28 {strides = array<i32>} : memref<4x256xf32, #tpu.memory_space<vmem>>, vector<4x256xf32>,
      } else {
      }
      %c0 = arith.constant 0 : index
      %c0_5 = arith.constant 0 : index
      %c0_6 = arith.constant 0 : index
      %11 = vector.load %arg4[%c0, %c0_5, %c0_6] : memref<2x4x256xf32, #tpu.memory_space<vmem>>, vector<2x4x256xf32>
      %c0_7 = arith.constant 0 : index
      %c0_8 = arith.constant 0 : index
      %12 = vector.load %arg8[%c0_7, %c0_8] : memref<4x256xf32, #tpu.memory_space<vmem>>, vector<4x256xf32>
      %cst = arith.constant dense<0.000000e+00> : vector<4x256xf32>
      %13 = vector.multi_reduction <add>, %11, %cst [0] : vector<2x4x256xf32> to vector<4x256xf32>
      %14 = arith.addf %12, %13 : vector<4x256xf32>
      %c0_9 = arith.constant 0 : index
      %c0_10 = arith.constant 0 : index
      %15 = vector.load %arg8[%c0_9, %c0_10] : memref<4x256xf32, #tpu.memory_space<vmem>>, vector<4x256xf32>
      tpu.vector_store %arg8[%c0_9, %c0_10], %14 {strides = array<i32>} : memref<4x256xf32, #tpu.memory_space<vmem>>, vector<4x256xf32>,
      %c0_11 = arith.constant 0 : index
      %c0_12 = arith.constant 0 : index
      %16 = vector.load %arg9[%c0_11, %c0_12] : memref<4x256xf32, #tpu.memory_space<vmem>>, vector<4x256xf32>
      %17 = arith.mulf %11, %11 : vector<2x4x256xf32>
      %cst_13 = arith.constant dense<0.000000e+00> : vector<4x256xf32>
      %18 = vector.multi_reduction <add>, %17, %cst_13 [0] : vector<2x4x256xf32> to vector<4x256xf32>
      %19 = arith.addf %16, %18 : vector<4x256xf32>
      %c0_14 = arith.constant 0 : index
      %c0_15 = arith.constant 0 : index
      %20 = vector.load %arg9[%c0_14, %c0_15] : memref<4x256xf32, #tpu.memory_space<vmem>>, vector<4x256xf32>
      tpu.vector_store %arg9[%c0_14, %c0_15], %19 {strides = array<i32>} : memref<4x256xf32, #tpu.memory_space<vmem>>, vector<4x256xf32>,
      %c0_i32_16 = arith.constant 0 : i32
      %21 = arith.cmpi eq, %arg2, %c0_i32_16 : i32
      %c0_i32_17 = arith.constant 0 : i32
      %22 = arith.cmpi eq, %arg3, %c0_i32_17 : i32
      %23 = arith.andi %21, %22 : i1
      %24 = arith.extui %23 : i1 to i32
      %c0_i32_18 = arith.constant 0 : i32
      %25 = arith.cmpi ne, %24, %c0_i32_18 : i32
      scf.if %25 {
        %c0_19 = arith.constant 0 : index
        %c0_20 = arith.constant 0 : index
        %26 = vector.load %arg8[%c0_19, %c0_20] : memref<4x256xf32, #tpu.memory_space<vmem>>, vector<4x256xf32>
        %cst_21 = arith.constant dense<0.000000e+00> : vector<4xf32>
        %27 = vector.multi_reduction <add>, %26, %cst_21 [1] : vector<4x256xf32> to vector<4xf32>
        %28 = vector.shape_cast %27 : vector<4xf32> to vector<4x1xf32>
        %c0_22 = arith.constant 0 : index
        %c0_23 = arith.constant 0 : index
        %29 = vector.load %arg9[%c0_22, %c0_23] : memref<4x256xf32, #tpu.memory_space<vmem>>, vector<4x256xf32>
        %cst_24 = arith.constant dense<0.000000e+00> : vector<4xf32>
        %30 = vector.multi_reduction <add>, %29, %cst_24 [1] : vector<4x256xf32> to vector<4xf32>
        %31 = vector.shape_cast %30 : vector<4xf32> to vector<4x1xf32>
        %cst_25 = arith.constant 0.001953125 : f32
        %32 = vector.broadcast %cst_25 : f32 to vector<4x1xf32>
        %33 = arith.mulf %28, %32 : vector<4x1xf32>
        %cst_26 = arith.constant 0.001953125 : f32
        %34 = vector.broadcast %cst_26 : f32 to vector<4x1xf32>
        %35 = arith.mulf %31, %34 : vector<4x1xf32>
        %36 = arith.mulf %33, %33 : vector<4x1xf32>
        %37 = arith.subf %35, %36 : vector<4x1xf32>
        %cst_27 = arith.constant 0.000000e+00 : f32
        %38 = vector.broadcast %cst_27 : f32 to vector<4x1xf32>
        %39 = arith.maximumf %37, %38 : vector<4x1xf32>
        %c0_28 = arith.constant 0 : index
        %c0_29 = arith.constant 0 : index
        %40 = vector.load %arg5[%c0_28, %c0_29] : memref<4x1xf32, #tpu.memory_space<vmem>>, vector<4x1xf32>
        %cst_30 = arith.constant 9.99999974E-6 : f32
        %41 = vector.broadcast %cst_30 : f32 to vector<4x1xf32>
        %42 = arith.addf %39, %41 : vector<4x1xf32>
        %43 = math.rsqrt %42 : vector<4x1xf32>
        %44 = arith.mulf %40, %43 : vector<4x1xf32>
        %c0_31 = arith.constant 0 : index
        %c0_32 = arith.constant 0 : index
        %45 = vector.load %arg10[%c0_31, %c0_32] : memref<4x1xf32, #tpu.memory_space<vmem>>, vector<4x1xf32>
        tpu.vector_store %arg10[%c0_31, %c0_32], %44 {strides = array<i32>} : memref<4x1xf32, #tpu.memory_space<vmem>>, vector<4x1xf32>,
        %c0_33 = arith.constant 0 : index
        %c0_34 = arith.constant 0 : index
        %46 = vector.load %arg6[%c0_33, %c0_34] : memref<4x1xf32, #tpu.memory_space<vmem>>, vector<4x1xf32>
        %47 = arith.mulf %33, %44 : vector<4x1xf32>
        %48 = arith.subf %46, %47 : vector<4x1xf32>
        %c0_35 = arith.constant 0 : index
        %c0_36 = arith.constant 0 : index
        %49 = vector.load %arg11[%c0_35, %c0_36] : memref<4x1xf32, #tpu.memory_space<vmem>>, vector<4x1xf32>
        tpu.vector_store %arg11[%c0_35, %c0_36], %48 {strides = array<i32>} : memref<4x1xf32, #tpu.memory_space<vmem>>, vector<4x1xf32>,
      } else {
      }
    } else {
    }
    %c1_i32 = arith.constant 1 : i32
    %3 = arith.cmpi eq, %arg1, %c1_i32 : i32
    %4 = arith.extui %3 : i1 to i32
    %c0_i32_1 = arith.constant 0 : i32
    %5 = arith.cmpi ne, %4, %c0_i32_1 : i32
    scf.if %5 {
      %c0 = arith.constant 0 : index
      %c0_2 = arith.constant 0 : index
      %c0_3 = arith.constant 0 : index
      %6 = vector.load %arg4[%c0, %c0_2, %c0_3] : memref<2x4x256xf32, #tpu.memory_space<vmem>>, vector<2x4x256xf32>
      %c0_4 = arith.constant 0 : index
      %c0_5 = arith.constant 0 : index
      %7 = vector.load %arg10[%c0_4, %c0_5] : memref<4x1xf32, #tpu.memory_space<vmem>>, vector<4x1xf32>
      %8 = vector.shape_cast %7 : vector<4x1xf32> to vector<1x4x1xf32>
      %9 = vector.broadcast %8 : vector<1x4x1xf32> to vector<2x4x256xf32>
      %10 = arith.mulf %6, %9 : vector<2x4x256xf32>
      %c0_6 = arith.constant 0 : index
      %c0_7 = arith.constant 0 : index
      %11 = vector.load %arg11[%c0_6, %c0_7] : memref<4x1xf32, #tpu.memory_space<vmem>>, vector<4x1xf32>
      %12 = vector.shape_cast %11 : vector<4x1xf32> to vector<1x4x1xf32>
      %13 = vector.broadcast %12 : vector<1x4x1xf32> to vector<2x4x256xf32>
      %14 = arith.addf %10, %13 : vector<2x4x256xf32>
      %c0_8 = arith.constant 0 : index
      %c0_9 = arith.constant 0 : index
      %c0_10 = arith.constant 0 : index
      %15 = vector.load %arg7[%c0_8, %c0_9, %c0_10] : memref<2x4x256xf32, #tpu.memory_space<vmem>>, vector<2x4x256xf32>
      tpu.vector_store %arg7[%c0_8, %c0_9, %c0_10], %14 {strides = array<i32>} : memref<2x4x256xf32, #tpu.memory_space<vmem>>, vector<2x4x256xf32>,
    } else {
    }
    return
  }
  func.func @transform_0(%arg0: i32, %arg1: i32, %arg2: i32, %arg3: i32) -> (i32, i32, i32) {
    %c0_i32 = arith.constant 0 : i32
    return %arg2, %arg0, %arg3 : i32, i32, i32
  }
  func.func @transform_1(%arg0: i32, %arg1: i32, %arg2: i32, %arg3: i32) -> (i32, i32) {
    %c0_i32 = arith.constant 0 : i32
    %c0_i32_0 = arith.constant 0 : i32
    return %arg0, %c0_i32 : i32, i32
  }
  func.func @transform_2(%arg0: i32, %arg1: i32, %arg2: i32, %arg3: i32) -> (i32, i32) {
    %c0_i32 = arith.constant 0 : i32
    %c0_i32_0 = arith.constant 0 : i32
    return %arg0, %c0_i32 : i32, i32
  }
  func.func @transform_3(%arg0: i32, %arg1: i32, %arg2: i32, %arg3: i32) -> (i32, i32, i32) {
    %0 = arith.muli %arg2, %arg1 : i32
    %1 = arith.muli %arg3, %arg1 : i32
    %c0_i32 = arith.constant 0 : i32
    return %0, %arg0, %1 : i32, i32, i32
  }
}

</mosaic_0001>

<bundles_post_ra>
// kernel: tpu_custom_call.1
= control target key start
LH: loop header
LB: loop body
LE: loop exit
PB: predicated region body
PF: predicated region fallthrough
CT: control target
= control target key end

     0   :  { %8 = vsyncpa [#allocation7], 0  ;;  %s828_s0 = inlined_call_operand.hbm [shape: f32[2,4,256], index: 0, kind: input, shape index: {}]   ;;  %s829_s1 = inlined_call_operand.vmem [shape: f32[4,1], index: 1, kind: input, shape index: {}]   ;;  %s830_s2 = inlined_call_operand.vmem [shape: f32[4,1], index: 2, kind: input, shape index: {}]   ;;  %s831_s3 = inlined_call_operand.hbm [shape: f32[2,4,256], index: 3, kind: output, shape index: {}]  }
   0x1   :  { %9 = vsyncpa [#allocation8], 0 }
   0x2   :  { %11 = vsyncpa [#allocation8 + $0x1], 0  ;;  %s710_s12 = smov 0   ;;  %s712_s13 = smov 0  }
   0x3   :  { %s714_s14 = smov 0  }
   0x4 LB: > { %s522_s15 = sadd.s32 4294967295, %s680_s14   ;;  %s523_s16 = sadd.s32 4294967294, %s680_s14   ;;  %s680_s14 = sphi %s714_s14, %s17_s14   ;;  %s676_s13 = sphi %s712_s13, %s842_s13   ;;  %s672_s12 = sphi %s710_s12, %s841_s12  }
   0x5   : > { %s39_s17 = sadd.s32 1, %s676_s13  ;;  %p524_p0 = scmp.ge.s32.totalorder %s680_s14, 1 }
   0x6   : > { %p41_p1 = scmp.ge.s32.totalorder %s39_s17, 2  ;;  %p164_p2 = scmp.lt.s32.totalorder %s680_s14, 3 }
   0x7   : > { %p732_p3 = scmp.eq.s32.totalorder %s522_s15, 0  ;;  %s682_s20 = smov [#allocation6]  }
   0x8   : > { %s844_s17 = smov (%p41_p1, %s39_s17), 0  ;;  %p738_p4 = pnand %p524_p0, %p164_p2 }
   0x9   : > { %s835_s18 = scalar_select %p732_p3, 1, 0 }
   0xa   : > { %s836_s19 = scalar_select %p738_p4, 1, 0 }
   0xb   : > { %s184_s21 = sshll.u32 %s682_s20, 4  ;;  %p546_p5 = pneg %p738_p4  ;;  %s185_s21 = int_to_ptr.vmem [resolvable:$true] %s184_s21 }
   0xc   : > { %s596_s25 = scalar_lea.hbm %s828_s0, 256 }
   0xd   : > { %p746_p6 = pnand %p732_p3, %p546_p5  ;;  %p597_p7 = scmp.ne.s32.totalorder %s828_s0, %s596_s25 }
   0xe   : > { %p603_p11 = scmp.lt.u32.totalorder %s596_s25, %s828_s0 }
   0xf   : > { %p598_p8 = pneg %p746_p6 }
  0x11   : > { %p599_p9 = pnand %p598_p8, %p597_p7 }
  0x13   : > { %p600_p10 = pneg %p599_p9 }
  0x15   : > { %p605_p12 = pnand %p603_p11, %p600_p10 }
  0x17   : > { %608 = shalt.err (!%p605_p12)
}
  0x18   : > { %s609_s30 = scalar_lea.vmem %s185_s21, 256  ;;  %p617_p2 = scmp.lt.s32.totalorder %s185_s21, %s185_s21 }
  0x19   : > { %p610_p13 = scmp.ne.s32.totalorder %s185_s21, %s609_s30  ;;  %p618_p5 = scmp.lt.s32.totalorder %s609_s30, %s609_s30 }
  0x1b   : > { %p612_p0 = pnand %p610_p13, %p598_p8  ;;  %p619_p3 = por %p618_p5, %p617_p2 }
  0x1d   : > { %p613_p1 = pneg %p612_p0 }
  0x1f   : > { %p620_p4 = pnand %p619_p3, %p613_p1 }
  0x21   : > { %623 = shalt.err (!%p620_p4)
}
  0x22   : > { %s683_s4 = smov 128   ;;  %s684_s5 = smov 8  }
  0x23   : > { %549 = dma.hbm_to_vmem [thread:$0]  (!%p746_p6), %s828_s0, 256, %s185_s21, [#allocation7], %s683_s4, %s683_s4, %s684_s5  }
  0x24   : > { %p838_p7 = scmp.ne.s32.totalorder %s836_s19, 0 }
  0x25   : > { %p839_p9 = scmp.ne.s32.totalorder (!%p838_p7), %s835_s18, 0 }
  0x26   : > { %214 = sbr.rel (%p838_p7) target bundleno = 394 (0x18a), region = 32 }
  0x2d   : > { %663 = dma.done.wait (%p839_p9), [#allocation7], 256  }
  0x2e   : > { %665 = vsyncadd (%p839_p9), [#allocation7], 4294967040  ;;  %p530_p3 = scmp.ne.s32.totalorder %s672_s12, 0 }
  0x2f   : > { %v267_v0 = vld [vmem:[#allocation6] sm:$0xff] (!%p530_p3)  ;;  %v268_v1 = vld [vmem:[#allocation6 + $0x8] sm:$0xff] (!%p530_p3)  ;;  %vm276_vm0 = vcmask (!%p530_p3), 1043456   ;;  %v335_v38 = vld [vmem:[%s829_s1] sm:$0xf] (!%p530_p3)  ;;  %vm339_vm1 = vcmask (!%p530_p3), 3072  }
  0x30   : > { %258 = sbr.rel (%p530_p3) target bundleno = 230 (0xe6), region = 40  ;;  %v272_v2 = vcombine.high (!%p530_p3), %v267_v0, %v267_v0  ;;  %v273_v3 = vcombine.high (!%p530_p3), %v268_v1, %v268_v1  ;;  %v277_v4 = vsel (!%p530_p3), %vm276_vm0, %v267_v0, 0.0  ;;  %v278_v5 = vsel (!%p530_p3), %vm276_vm0, %v268_v1, 0.0  ;;  %v341_v41 = vld [vmem:[%s830_s2] sm:$0xf] (!%p530_p3) }
  0x31   : > { %v279_v6 = vadd.f32 (!%p530_p3), %v278_v5, %v277_v4  ;;  %v290_v7 = vmul.f32 (!%p530_p3), %v267_v0, %v267_v0  ;;  %v291_v8 = vmul.f32 (!%p530_p3), %v268_v1, %v268_v1 }
  0x32   : > { %v280_v9 = vsel (!%p530_p3), %vm276_vm0, %v272_v2, 0.0  ;;  %v281_v10 = vsel (!%p530_p3), %vm276_vm0, %v273_v3, 0.0 }
  0x33   : > { %v282_v11 = vadd.f32 (!%p530_p3), %v281_v10, %v280_v9  ;;  %v294_v12 = vcombine.high (!%p530_p3), %v290_v7, %v290_v7  ;;  %v295_v13 = vcombine.high (!%p530_p3), %v291_v8, %v291_v8  ;;  %v298_v14 = vsel (!%p530_p3), %vm276_vm0, %v290_v7, 0.0 }
  0x34   : > { %v299_v15 = vsel (!%p530_p3), %vm276_vm0, %v291_v8, 0.0 }
  0x35   : > { %v285_v16 = vcombine.low (!%p530_p3), %v279_v6, %v282_v11  ;;  %v536_v17 = vcombine.low (!%p530_p3), %v282_v11, %v282_v11  ;;  %v300_v18 = vadd.f32 (!%p530_p3), %v299_v15, %v298_v14  ;;  %v301_v19 = vsel (!%p530_p3), %vm276_vm0, %v294_v12, 0.0 }
  0x36   : > { %v302_v20 = vsel (!%p530_p3), %vm276_vm0, %v295_v13, 0.0 }
  0x37   : > { %v316_v21 = vsel %vm276_vm0, %v285_v16, 0.0  ;;  %v317_v22 = vsel %vm276_vm0, %v536_v17, 0.0  ;;  %v303_v23 = vadd.f32 %v302_v20, %v301_v19 }
  0x38   : > { %v318_v24 = vadd.f32 %v317_v22, %v316_v21 }
  0x39   : > { %v306_v25 = vcombine.low %v300_v18, %v303_v23  ;;  %v537_v26 = vcombine.low %v303_v23, %v303_v23 }
  0x3a   : > { %319 = vadd.xlane.f32.xlu0 %v318_v24 }
  0x3b   : > { %v325_v27 = vsel %vm276_vm0, %v306_v25, 0.0  ;;  %v326_v28 = vsel %vm276_vm0, %v537_v26, 0.0 }
  0x3c   : > { %v327_v29 = vadd.f32 %v326_v28, %v325_v27 }
  0x3e   : > { %328 = vadd.xlane.f32.xlu0 %v327_v29 }
  0xc7   : > { %v320_v30 = vpop.xlane.xlu0 %319 }
  0xc8   : > { %v330_v31 = vmul.f32 0.001953125, %v320_v30 }
  0xca   : > { %v332_v33 = vmul.f32 %v330_v31, %v330_v31 }
  0xcb   : > { %v329_v32 = vpop.xlane.xlu0 %328 }
  0xcc   : > { %v331_v34 = vmul.f32 0.001953125, %v329_v32 }
  0xce   : > { %v333_v35 = vsub.f32 %v331_v34, %v332_v33 }
  0xd0   : > { %v334_v36 = vmax.f32 %v333_v35, 0.0 }
  0xd2   : > { %v336_v37 = vadd.f32 1e-05, %v334_v36 }
  0xd4   : > { %593 = vrsqrt.f32 %v336_v37 }
  0xde   : > { %v594_v39 = vpop.eup %593 }
  0xdf   : > { %v338_v40 = vmul.f32 %v594_v39, %v335_v38 }
  0xe1   : > { %340 = vst.msk [vmem:[#allocation4] sm:$0xf] %vm339_vm1, %v338_v40  ;;  %v342_v42 = vmul.f32 %v338_v40, %v330_v31 }
  0xe3   : > { %v343_v43 = vsub.f32 %v341_v41, %v342_v42 }
  0xe5   : > { %344 = vst.msk [vmem:[#allocation5] sm:$0xf] %vm339_vm1, %v343_v43 }
  0xe6 PF: > { %p531_p4 = scmp.ne.s32.totalorder %s672_s12, 1 }
  0xe7   : > { %v685_v45 = vmov (!%p531_p4), 0   ;;  %v686_v47 = vmov (!%p531_p4), 839922192   ;;  %v359_v49 = vlaneseq (!%p531_p4)  ;;  %v349_v55 = vld [vmem:[#allocation6] sm:$0xff] (!%p531_p4)  ;;  %v350_v56 = vld [vmem:[#allocation6 + $0x8] sm:$0xff] (!%p531_p4) }
  0xe8   : > { %348 = sbr.rel (%p531_p4) target bundleno = 370 (0x172), region = 52  ;;  %v351_v44 = vld [vmem:[#allocation4] sm:$0xf] (!%p531_p4)  ;;  %595 = vset.pattern.permute.xlu0 (!%p531_p4), %v685_v45  ;;  %v357_v48 = vunpack.c.l.s4 (!%p531_p4), %v686_v47 }
  0xe9   : > { %354 = vperm.xlu0 (!%p531_p4), %595, %v351_v44   ;;  %v360_v51 = vshrl.u32 (!%p531_p4), %v359_v49, 7 }
  0xea   : > { %v358_v50 = vunpack.c.0.s8 (!%p531_p4), %v357_v48 }
  0xec   : > { %v366_v46 = vld [vmem:[#allocation5] sm:$0xf] (!%p531_p4)  ;;  %v361_v52 = vsub.s32 (!%p531_p4), %v358_v50, %v360_v51 }
  0xed   : > { %369 = vperm.xlu0 (!%p531_p4), %595, %v366_v46  }
 0x168   : > { %v355_v53 = vpop.permute.xlu0 %354 }
 0x169   : > { %v362_v54 = vrot.slane %v355_v53, %v361_v52 }
 0x16b   : > { %v364_v58 = vmul.f32 %v362_v54, %v349_v55  ;;  %v365_v59 = vmul.f32 %v362_v54, %v350_v56 }
 0x16c   : > { %v370_v57 = vpop.permute.xlu0 %369 }
 0x16d   : > { %v377_v60 = vrot.slane %v370_v57, %v361_v52 }
 0x16f   : > { %v379_v61 = vadd.f32 %v377_v60, %v364_v58  ;;  %v380_v62 = vadd.f32 %v377_v60, %v365_v59 }
 0x171   : > { %381 = vst [vmem:[#allocation9] sm:$0xff] %v379_v61  ;;  %382 = vst [vmem:[#allocation9 + $0x8] sm:$0xff] %v380_v62 }
 0x172 PF: > { %p794_p6 = scmp.eq.s32.totalorder %s522_s15, 1  ;;  %s687_s18 = smov [#allocation9]  }
 0x173   : > { %s404_s19 = sshll.u32 %s687_s18, 4  ;;  %s405_s19 = int_to_ptr.vmem [resolvable:$true] %s404_s19 }
 0x174   : > { %s624_s20 = scalar_lea.vmem %s405_s19, 256  ;;  %s630_s21 = scalar_lea.vmem %s405_s19, 512 }
 0x175   : > { %p625_p8 = scmp.ne.s32.totalorder %s405_s19, %s624_s20  ;;  %p631_p12 = scmp.lt.s32.totalorder %s405_s19, %s405_s19 }
 0x176   : > { %p632_p13 = scmp.lt.s32.totalorder %s630_s21, %s624_s20 }
 0x177   : > { %p626_p10 = pnand %p625_p8, %p794_p6 }
 0x178   : > { %p633_p0 = por %p632_p13, %p631_p12 }
 0x179   : > { %p627_p11 = pneg %p626_p10 }
 0x17b   : > { %p634_p1 = pnand %p633_p0, %p627_p11 }
 0x17d   : > { %637 = shalt.err (!%p634_p1)
}
 0x17e   : > { %s638_s23 = scalar_lea.hbm %s831_s3, 256 }
 0x17f   : > { %p639_p2 = scmp.ne.s32.totalorder %s831_s3, %s638_s23  ;;  %p644_p9 = scmp.lt.u32.totalorder %s638_s23, %s831_s3 }
 0x181   : > { %p640_p5 = pnand %p639_p2, %p794_p6 }
 0x183   : > { %p641_p7 = pneg %p640_p5 }
 0x185   : > { %p646_p3 = pnand %p644_p9, %p641_p7 }
 0x187   : > { %649 = shalt.err (!%p646_p3)
}
 0x188   : > { %s688_s28 = smov 128   ;;  %s689_s29 = smov 8  }
 0x189   : > { %543 = dma.vmem_to_hbm [thread:$0]  (%p794_p6), %s405_s19, 256, %s831_s3, [#allocation8], %s688_s28, %s688_s28, %s689_s29  }
 0x18a PF: > { %p557_p4 = scmp.ge.s32.totalorder %s680_s14, 2  ;;  %p558_p8 = scmp.eq.s32.totalorder %s523_s16, 1 }
 0x18c   : > { %p551_p10 = pnand %p558_p8, %p557_p4 }
 0x18e   : > { %667 = dma.done.wait (!%p551_p10), [#allocation8], 256  }
 0x18f   : > { %669 = vsyncadd (!%p551_p10), [#allocation8], 4294967040  ;;  %s17_s14 = sadd.s32 1, %s680_s14   ;;  %s841_s12 = smov %s676_s13 }
 0x190   : > { %p14_p11 = scmp.ge.s32.totalorder %s17_s14, 4   ;;  %s842_s13 = smov %s844_s17 }
 0x192   :  { %16 = sbr.rel (!%p14_p11) target bundleno = 4 (0x4), region = 92 }
 0x199   :  { %425 = vsyncpa [#allocation7], 1 }
 0x19a   :  { %427 = vsyncpa [#allocation7 + $0x1], 1 }
 0x19b   :  { %428 = vsyncpa [#allocation8], 1 }
 0x19c   :  { %430 = vsyncpa [#allocation8 + $0x1], 1 }

</bundles_post_ra>
